<compile_context>
chip_gen: v5e
topology: v5e:2x2
jax: 0.10.0
libtpu: 0.0.40
codegen_flags: <defaults>
</compile_context>

<pallas_src>
import jax
import jax.numpy as jnp
from jax import lax
from jax.experimental import pallas as pl
from jax.experimental.pallas import tpu as pltpu


def _round_up(x: int, m: int) -> int:
    return ((x + m - 1) // m) * m


def _default_num_cores() -> int:
    """2 only on parts with >1 TensorCore per chip (v7x; v4/v5p megacore)."""
    try:
        dev = jax.devices()[0]
        if dev.platform != "tpu":
            return 1
        kind = dev.device_kind.lower().replace(" ", "")
        if "v7" in kind or "v4" in kind or "v5p" in kind:
            return 2
    except Exception:
        pass
    return 1


def _default_vmem_limit() -> int:
    """Scoped-VMEM limit = physical VMEM / 2 (64 MiB on v5e/v6e, 32 MiB on v7x).
    Falls back to a conservative 32 MiB if the hardware query fails."""
    cap = 64 * 1024 * 1024
    try:
        cap = int(getattr(pltpu.get_tpu_info(), "vmem_capacity_bytes", cap))
    except Exception:
        pass
    return max(32 * 1024 * 1024, min(cap // 2, 100 * 1024 * 1024))


def _choose_tiles(N: int, C: int, itemsize: int, vmem_limit: int, num_cores: int):
    """Pick (block_n, block_c) so the double-buffered x tile PLUS its f32
    temporaries (upcast, exp, iota, where) fit in ~60% of the scoped VMEM."""
    bytes_per_elem = 2 * itemsize + 16          # dbl-buffered input + f32 temps
    tile_budget = (vmem_limit * 3) // 5
    rows_per_core = pl.cdiv(N, num_cores)

    if C * bytes_per_elem * 256 <= tile_budget:
        # Whole class axis in one block; spend the budget on rows.
        block_c = C
        bn = tile_budget // (C * bytes_per_elem)
    else:
        # Vocab-scale C: chunk the class axis so ~512-row tiles still fit.
        block_c = max(128, ((tile_budget // (512 * bytes_per_elem)) // 128) * 128)
        bn = tile_budget // (block_c * bytes_per_elem)

    bn = min(bn, 1024, _round_up(rows_per_core, 8))
    block_n = max(8, (bn // 8) * 8)
    # Never make a block taller than the array (keeps ragged handling simple).
    if N >= 8:
        block_n = min(block_n, (N // 8) * 8)
    else:
        block_n = N
    return block_n, block_c


def _make_kernel(target_pseudo_label: int, n_rows: int, n_cols: int,
                 block_n: int, block_c: int, blocks_per_core: int):
    def kernel(nsel_ref, bids_ref, x_ref, tp_ref, sum_ref, cnt_ref,
               m_sc, s_sc, xt_sc, acc_loss, acc_cnt):
        c = pl.program_id(0)           # core (parallel) axis
        j = pl.program_id(1)           # row-block (arbitrary) axis
        kc = pl.program_id(2)          # class-chunk (arbitrary, innermost) axis
        nj = pl.num_programs(1)
        nkc = pl.num_programs(2)

        @pl.when(jnp.logical_and(j == 0, kc == 0))
        def _():
            acc_loss[...] = jnp.zeros_like(acc_loss)
            acc_cnt[...] = jnp.zeros_like(acc_cnt)

        @pl.when(kc == 0)
        def _():
            m_sc[...] = jnp.full_like(m_sc, -jnp.inf)
            s_sc[...] = jnp.zeros_like(s_sc)
            xt_sc[...] = jnp.zeros_like(xt_sc)

        # Logits stream in their native dtype; upcast on the VPU under the DMA.
        x = x_ref[...].astype(jnp.float32)                    # (block_n, block_c)
        tp = tp_ref[...]                                      # (block_n, 2) int32
        t = tp[:, 0:1]                                        # targets

        col = kc * block_c + lax.broadcasted_iota(jnp.int32, x.shape, 1)
        col_valid = col < n_cols                              # ragged last C chunk

        # Target-class logit: exactly one class chunk contributes per row.
        xt_sc[...] += jnp.sum(jnp.where(col == t, x, 0.0), axis=-1, keepdims=True)

        # Online (flash-style) logsumexp across class chunks.
        xm = jnp.where(col_valid, x, -jnp.inf)
        m_new = jnp.maximum(m_sc[...], jnp.max(xm, axis=-1, keepdims=True))
        p_exp = jnp.where(col_valid, jnp.exp(x - m_new), 0.0)
        s_sc[...] = s_sc[...] * jnp.exp(m_sc[...] - m_new) + jnp.sum(
            p_exp, axis=-1, keepdims=True)
        m_sc[...] = m_new

        @pl.when(kc == nkc - 1)
        def _():
            blk = bids_ref[c * blocks_per_core + j]
            row0 = blk * block_n
            row_ids = row0 + lax.broadcasted_iota(jnp.int32, (block_n, 1), 0)
            valid = row_ids < n_rows                          # ragged last N block
            live = j < nsel_ref[c]                            # dead (filler) step
            p = tp[:, 1:2]                                    # pseudo labels
            sel = jnp.logical_and(
                jnp.logical_and(p == target_pseudo_label, valid), live)
            lse = m_sc[...] + jnp.log(s_sc[...])
            # jnp.where (not mask-multiply): NaN/Inf from garbage rows can't leak.
            acc_loss[...] += jnp.where(sel, lse - xt_sc[...], 0.0)
            acc_cnt[...] += jnp.where(sel, 1.0, 0.0)

        # One cross-sublane reduction + scalar store per core, at the very end.
        @pl.when(jnp.logical_and(j == nj - 1, kc == nkc - 1))
        def _():
            sum_ref[...] = jnp.sum(acc_loss[...]).reshape(1, 1, 1)
            cnt_ref[...] = jnp.sum(acc_cnt[...]).reshape(1, 1, 1)

    return kernel


def selective_cross_entropy_loss(inputs, targets, pseudo_labels,
                                 target_pseudo_label: int = 0,
                                 reduction: str = "mean",
                                 num_cores: int | None = None,
                                 block_n: int | None = None,
                                 block_c: int | None = None):
    """inputs: (N, C) logits (any float dtype); targets/pseudo_labels: (N,) ints."""
    # TODO(synk): per-class `weight` vector not implemented (module default None).
    # TODO(synk): reduction='none' needs dynamic output shapes; not supported.
    N, C = inputs.shape
    if num_cores is None:
        num_cores = _default_num_cores()
    vmem_limit = _default_vmem_limit()
    itemsize = jnp.dtype(inputs.dtype).itemsize

    if block_n is None or block_c is None:
        bn_auto, bc_auto = _choose_tiles(N, C, itemsize, vmem_limit, num_cores)
        if block_n is None:
            block_n = bn_auto
        if block_c is None:
            block_c = bc_auto

    nblocks = pl.cdiv(N, block_n)
    bpc = pl.cdiv(nblocks, num_cores)           # row-block steps per core
    kc_blocks = pl.cdiv(C, block_c)

    # targets + pseudo_labels packed into a single (N, 2) int32 operand.
    tp = jnp.stack([targets.astype(jnp.int32),
                    pseudo_labels.astype(jnp.int32)], axis=1)

    # ---- compacted row-block schedule (block skipping via scalar prefetch) ----
    # Selected blocks first (round-robin over cores); dead steps repeat the last
    # live block so their DMA is elided; the kernel gates them to zero anyway.
    sel_rows = pseudo_labels.astype(jnp.int32) == jnp.int32(target_pseudo_label)
    pad_rows = nblocks * block_n - N
    sel_rows_p = jnp.pad(sel_rows, (0, pad_rows), constant_values=False)
    blk_has_sel = jnp.any(sel_rows_p.reshape(nblocks, block_n), axis=1)
    num_sel = jnp.sum(blk_has_sel.astype(jnp.int32))
    order = jnp.argsort(jnp.logical_not(blk_has_sel).astype(jnp.int32))

    cids = jnp.arange(num_cores, dtype=jnp.int32)
    kks = jnp.arange(bpc, dtype=jnp.int32)
    idx_lin = cids[:, None] + kks[None, :] * num_cores          # (cores, bpc)
    live = idx_lin < num_sel
    safe = jnp.where(live, idx_lin, jnp.maximum(num_sel - 1, 0))
    bids = jnp.take(order, safe).reshape(-1).astype(jnp.int32)  # (cores*bpc,)
    nsel_core = jnp.clip((num_sel - cids + num_cores - 1) // num_cores,
                         0, bpc).astype(jnp.int32)              # (cores,)

    def x_map(c, j, kc, nsel_ref, bids_ref):
        # Dead steps keep both indices constant so their input DMA is elided.
        blk = bids_ref[c * bpc + j]
        kc_eff = jnp.where(j < nsel_ref[c], kc, 0)
        return (blk, kc_eff)

    def tp_map(c, j, kc, nsel_ref, bids_ref):
        return (bids_ref[c * bpc + j], 0)

    def out_map(c, j, kc, nsel_ref, bids_ref):
        return (c, 0, 0)

    kernel = _make_kernel(int(target_pseudo_label), N, C, block_n, block_c, bpc)

    loss_sum, count = pl.pallas_call(
        kernel,
        out_shape=(jax.ShapeDtypeStruct((num_cores, 1, 1), jnp.float32),
                   jax.ShapeDtypeStruct((num_cores, 1, 1), jnp.float32)),
        grid_spec=pltpu.PrefetchScalarGridSpec(
            num_scalar_prefetch=2,
            grid=(num_cores, bpc, kc_blocks),
            in_specs=[
                pl.BlockSpec((block_n, block_c), x_map),
                pl.BlockSpec((block_n, 2), tp_map),
            ],
            out_specs=[
                pl.BlockSpec((1, 1, 1), out_map),
                pl.BlockSpec((1, 1, 1), out_map),
            ],
            scratch_shapes=[
                pltpu.VMEM((block_n, 1), jnp.float32),   # running max
                pltpu.VMEM((block_n, 1), jnp.float32),   # running sum(exp)
                pltpu.VMEM((block_n, 1), jnp.float32),   # target-class logit
                pltpu.VMEM((block_n, 1), jnp.float32),   # masked loss accumulator
                pltpu.VMEM((block_n, 1), jnp.float32),   # masked count accumulator
            ],
        ),
        compiler_params=pltpu.CompilerParams(
            dimension_semantics=("parallel", "arbitrary", "arbitrary"),
            vmem_limit_bytes=vmem_limit,
        ),
    )(nsel_core, bids, inputs, tp)

    s = jnp.sum(loss_sum)
    n = jnp.sum(count)
    if reduction == "mean":
        return jnp.where(n > 0, s / jnp.maximum(n, 1.0), jnp.float32(0.0))
    elif reduction == "sum":
        return s
    else:
        raise NotImplementedError(
            "reduction='none' needs dynamic output shapes; not supported")


def _reference(inputs, targets, pseudo_labels, target_pseudo_label=0):
    mask = (pseudo_labels == target_pseudo_label)
    logp = jax.nn.log_softmax(inputs.astype(jnp.float32), axis=-1)
    per = -jnp.take_along_axis(
        logp, targets[:, None].astype(jnp.int32), axis=-1)[:, 0]
    msk = mask.astype(jnp.float32)
    n = jnp.sum(msk)
    return jnp.where(n > 0, jnp.sum(per * msk) / jnp.maximum(n, 1.0), 0.0)


if __name__ == "__main__":
    key = jax.random.PRNGKey(0)
    ks = jax.random.split(key, 8)

    # Case 1: f32 logits, N divisible by 8.
    N, C = 16, 32
    x = jax.random.normal(ks[0], (N, C), dtype=jnp.float32)
    targets = jax.random.randint(ks[1], (N,), 0, C, dtype=jnp.int32)
    pseudo = jax.random.randint(ks[2], (N,), 0, 2, dtype=jnp.int32)
    loss = jax.block_until_ready(
        selective_cross_entropy_loss(x, targets, pseudo, 0, "mean"))
    ref = _reference(x, targets, pseudo, 0)
    assert jnp.allclose(loss, ref, atol=1e-5, rtol=1e-5), (loss, ref)

    # Case 2: bf16 logits, ragged N (exercises the row-validity mask, no padding).
    N2, C2 = 13, 40
    x2 = jax.random.normal(ks[3], (N2, C2), dtype=jnp.bfloat16)
    targets2 = jax.random.randint(ks[4], (N2,), 0, C2, dtype=jnp.int32)
    pseudo2 = jax.random.randint(ks[5], (N2,), 0, 3, dtype=jnp.int32)
    loss2 = jax.block_until_ready(
        selective_cross_entropy_loss(x2, targets2, pseudo2, 1, "mean"))
    ref2 = _reference(x2, targets2, pseudo2, 1)
    assert jnp.allclose(loss2, ref2, atol=1e-4, rtol=1e-4), (loss2, ref2)

    # Case 3: empty selection -> 0.0 (module semantics).
    loss3 = jax.block_until_ready(
        selective_cross_entropy_loss(x, targets, pseudo, 5, "mean"))
    assert jnp.allclose(loss3, 0.0), loss3

    # Case 4: forced class-axis tiling + ragged N and C + sparse block selection
    # (exercises online logsumexp, lane mask, block skipping, dead-step gating).
    N4, C4 = 21, 300
    x4 = jax.random.normal(ks[6], (N4, C4), dtype=jnp.float32)
    targets4 = jax.random.randint(ks[7], (N4,), 0, C4, dtype=jnp.int32)
    pseudo4 = jnp.where(jnp.arange(N4) < 6, 0, 1).astype(jnp.int32)
    loss4 = jax.block_until_ready(
        selective_cross_entropy_loss(x4, targets4, pseudo4, 0, "mean",
                                     block_n=8, block_c=128))
    ref4 = _reference(x4, targets4, pseudo4, 0)
    assert jnp.allclose(loss4, ref4, atol=1e-4, rtol=1e-5), (loss4, ref4)

    print("KERNEL_OK")
</pallas_src>

<mosaic_0001>
module attributes {stable_mosaic.version = 11 : i64} {
  func.func @kernel(%arg0: i32, %arg1: i32, %arg2: i32, %arg3: memref<1xi32, #tpu.memory_space<smem>>, %arg4: memref<1xi32, #tpu.memory_space<smem>>, %arg5: memref<16x32xf32, #tpu.memory_space<vmem>>, %arg6: memref<16x2xi32, #tpu.memory_space<vmem>>, %arg7: memref<1x1x1xf32, #tpu.memory_space<vmem>>, %arg8: memref<1x1x1xf32, #tpu.memory_space<vmem>>, %arg9: memref<16x1xf32, #tpu.memory_space<vmem>>, %arg10: memref<16x1xf32, #tpu.memory_space<vmem>>, %arg11: memref<16x1xf32, #tpu.memory_space<vmem>>, %arg12: memref<16x1xf32, #tpu.memory_space<vmem>>, %arg13: memref<16x1xf32, #tpu.memory_space<vmem>>) attributes {dimension_semantics = [#tpu.dimension_semantics<parallel>, #tpu.dimension_semantics<arbitrary>, #tpu.dimension_semantics<arbitrary>], iteration_bounds = array<i64: 1, 1, 1>, scalar_prefetch = 2 : i64, scratch_operands = 5 : i64, tpu.core_type = #tpu.core_type<tc>, window_params = [{transform_indices = @transform_0, window_bounds = array<i64: 16, 32>}, {transform_indices = @transform_1, window_bounds = array<i64: 16, 2>}, {transform_indices = @transform_2, window_bounds = array<i64: 1, 1, 1>}, {transform_indices = @transform_3, window_bounds = array<i64: 1, 1, 1>}]} {
    %c0_i32 = arith.constant 0 : i32
    %0 = arith.cmpi eq, %arg1, %c0_i32 : i32
    %c0_i32_0 = arith.constant 0 : i32
    %1 = arith.cmpi eq, %arg2, %c0_i32_0 : i32
    %2 = arith.andi %0, %1 : i1
    %3 = arith.extui %2 : i1 to i32
    %c0_i32_1 = arith.constant 0 : i32
    %4 = arith.cmpi ne, %3, %c0_i32_1 : i32
    scf.if %4 {
      %cst_32 = arith.constant 0.000000e+00 : f32
      %55 = vector.broadcast %cst_32 : f32 to vector<16x1xf32>
      %c0_33 = arith.constant 0 : index
      %c0_34 = arith.constant 0 : index
      %56 = vector.load %arg12[%c0_33, %c0_34] : memref<16x1xf32, #tpu.memory_space<vmem>>, vector<16x1xf32>
      tpu.vector_store %arg12[%c0_33, %c0_34], %55 {strides = array<i32>} : memref<16x1xf32, #tpu.memory_space<vmem>>, vector<16x1xf32>,
      %cst_35 = arith.constant 0.000000e+00 : f32
      %57 = vector.broadcast %cst_35 : f32 to vector<16x1xf32>
      %c0_36 = arith.constant 0 : index
      %c0_37 = arith.constant 0 : index
      %58 = vector.load %arg13[%c0_36, %c0_37] : memref<16x1xf32, #tpu.memory_space<vmem>>, vector<16x1xf32>
      tpu.vector_store %arg13[%c0_36, %c0_37], %57 {strides = array<i32>} : memref<16x1xf32, #tpu.memory_space<vmem>>, vector<16x1xf32>,
    } else {
    }
    %c0_i32_2 = arith.constant 0 : i32
    %5 = arith.cmpi eq, %arg2, %c0_i32_2 : i32
    %6 = arith.extui %5 : i1 to i32
    %c0_i32_3 = arith.constant 0 : i32
    %7 = arith.cmpi ne, %6, %c0_i32_3 : i32
    scf.if %7 {
      %cst_32 = arith.constant 0xFF800000 : f32
      %55 = vector.broadcast %cst_32 : f32 to vector<16x1xf32>
      %c0_33 = arith.constant 0 : index
      %c0_34 = arith.constant 0 : index
      %56 = vector.load %arg9[%c0_33, %c0_34] : memref<16x1xf32, #tpu.memory_space<vmem>>, vector<16x1xf32>
      tpu.vector_store %arg9[%c0_33, %c0_34], %55 {strides = array<i32>} : memref<16x1xf32, #tpu.memory_space<vmem>>, vector<16x1xf32>,
      %cst_35 = arith.constant 0.000000e+00 : f32
      %57 = vector.broadcast %cst_35 : f32 to vector<16x1xf32>
      %c0_36 = arith.constant 0 : index
      %c0_37 = arith.constant 0 : index
      %58 = vector.load %arg10[%c0_36, %c0_37] : memref<16x1xf32, #tpu.memory_space<vmem>>, vector<16x1xf32>
      tpu.vector_store %arg10[%c0_36, %c0_37], %57 {strides = array<i32>} : memref<16x1xf32, #tpu.memory_space<vmem>>, vector<16x1xf32>,
      %cst_38 = arith.constant 0.000000e+00 : f32
      %59 = vector.broadcast %cst_38 : f32 to vector<16x1xf32>
      %c0_39 = arith.constant 0 : index
      %c0_40 = arith.constant 0 : index
      %60 = vector.load %arg11[%c0_39, %c0_40] : memref<16x1xf32, #tpu.memory_space<vmem>>, vector<16x1xf32>
      tpu.vector_store %arg11[%c0_39, %c0_40], %59 {strides = array<i32>} : memref<16x1xf32, #tpu.memory_space<vmem>>, vector<16x1xf32>,
    } else {
    }
    %c0 = arith.constant 0 : index
    %c0_4 = arith.constant 0 : index
    %8 = vector.load %arg5[%c0, %c0_4] : memref<16x32xf32, #tpu.memory_space<vmem>>, vector<16x32xf32>
    %c0_5 = arith.constant 0 : index
    %c0_6 = arith.constant 0 : index
    %9 = vector.load %arg6[%c0_5, %c0_6] : memref<16x2xi32, #tpu.memory_space<vmem>>, vector<16x2xi32>
    %10 = vector.extract_strided_slice %9 {offsets = [0, 0], sizes = [16, 1], strides = [1, 1]} : vector<16x2xi32> to vector<16x1xi32>
    %c32_i32 = arith.constant 32 : i32
    %11 = arith.muli %arg2, %c32_i32 : i32
    %12 = tpu.iota {dimensions = array<i32: 1>} : vector<16x32xi32>
    %13 = vector.broadcast %11 : i32 to vector<16x32xi32>
    %14 = arith.addi %13, %12 : vector<16x32xi32>
    %c32_i32_7 = arith.constant 32 : i32
    %15 = vector.broadcast %c32_i32_7 : i32 to vector<16x32xi32>
    %16 = arith.cmpi slt, %14, %15 : vector<16x32xi32>
    %c0_8 = arith.constant 0 : index
    %c0_9 = arith.constant 0 : index
    %17 = vector.load %arg11[%c0_8, %c0_9] : memref<16x1xf32, #tpu.memory_space<vmem>>, vector<16x1xf32>
    %18 = vector.broadcast %10 : vector<16x1xi32> to vector<16x32xi32>
    %19 = arith.cmpi eq, %14, %18 : vector<16x32xi32>
    %cst = arith.constant 0.000000e+00 : f32
    %20 = vector.broadcast %cst : f32 to vector<16x32xf32>
    %21 = arith.select %19, %8, %20 : vector<16x32xi1>, vector<16x32xf32>
    %cst_10 = arith.constant dense<0.000000e+00> : vector<16xf32>
    %22 = vector.multi_reduction <add>, %21, %cst_10 [1] : vector<16x32xf32> to vector<16xf32>
    %23 = vector.shape_cast %22 : vector<16xf32> to vector<16x1xf32>
    %24 = arith.addf %17, %23 : vector<16x1xf32>
    %c0_11 = arith.constant 0 : index
    %c0_12 = arith.constant 0 : index
    %25 = vector.load %arg11[%c0_11, %c0_12] : memref<16x1xf32, #tpu.memory_space<vmem>>, vector<16x1xf32>
    tpu.vector_store %arg11[%c0_11, %c0_12], %24 {strides = array<i32>} : memref<16x1xf32, #tpu.memory_space<vmem>>, vector<16x1xf32>,
    %cst_13 = arith.constant 0xFF800000 : f32
    %26 = vector.broadcast %cst_13 : f32 to vector<16x32xf32>
    %27 = arith.select %16, %8, %26 : vector<16x32xi1>, vector<16x32xf32>
    %c0_14 = arith.constant 0 : index
    %c0_15 = arith.constant 0 : index
    %28 = vector.load %arg9[%c0_14, %c0_15] : memref<16x1xf32, #tpu.memory_space<vmem>>, vector<16x1xf32>
    %cst_16 = arith.constant dense<0xFF800000> : vector<16xf32>
    %29 = vector.multi_reduction <maximumf>, %27, %cst_16 [1] : vector<16x32xf32> to vector<16xf32>
    %30 = vector.shape_cast %29 : vector<16xf32> to vector<16x1xf32>
    %31 = arith.maximumf %28, %30 : vector<16x1xf32>
    %32 = vector.broadcast %31 : vector<16x1xf32> to vector<16x32xf32>
    %33 = arith.subf %8, %32 : vector<16x32xf32>
    %34 = math.exp %33 : vector<16x32xf32>
    %cst_17 = arith.constant 0.000000e+00 : f32
    %35 = vector.broadcast %cst_17 : f32 to vector<16x32xf32>
    %36 = arith.select %16, %34, %35 : vector<16x32xi1>, vector<16x32xf32>
    %c0_18 = arith.constant 0 : index
    %c0_19 = arith.constant 0 : index
    %37 = vector.load %arg10[%c0_18, %c0_19] : memref<16x1xf32, #tpu.memory_space<vmem>>, vector<16x1xf32>
    %c0_20 = arith.constant 0 : index
    %c0_21 = arith.constant 0 : index
    %38 = vector.load %arg9[%c0_20, %c0_21] : memref<16x1xf32, #tpu.memory_space<vmem>>, vector<16x1xf32>
    %39 = arith.subf %38, %31 : vector<16x1xf32>
    %40 = math.exp %39 : vector<16x1xf32>
    %41 = arith.mulf %37, %40 : vector<16x1xf32>
    %cst_22 = arith.constant dense<0.000000e+00> : vector<16xf32>
    %42 = vector.multi_reduction <add>, %36, %cst_22 [1] : vector<16x32xf32> to vector<16xf32>
    %43 = vector.shape_cast %42 : vector<16xf32> to vector<16x1xf32>
    %44 = arith.addf %41, %43 : vector<16x1xf32>
    %c0_23 = arith.constant 0 : index
    %c0_24 = arith.constant 0 : index
    %45 = vector.load %arg10[%c0_23, %c0_24] : memref<16x1xf32, #tpu.memory_space<vmem>>, vector<16x1xf32>
    tpu.vector_store %arg10[%c0_23, %c0_24], %44 {strides = array<i32>} : memref<16x1xf32, #tpu.memory_space<vmem>>, vector<16x1xf32>,
    %c0_25 = arith.constant 0 : index
    %c0_26 = arith.constant 0 : index
    %46 = vector.load %arg9[%c0_25, %c0_26] : memref<16x1xf32, #tpu.memory_space<vmem>>, vector<16x1xf32>
    tpu.vector_store %arg9[%c0_25, %c0_26], %31 {strides = array<i32>} : memref<16x1xf32, #tpu.memory_space<vmem>>, vector<16x1xf32>,
    %c0_i32_27 = arith.constant 0 : i32
    %47 = arith.cmpi eq, %arg2, %c0_i32_27 : i32
    %48 = arith.extui %47 : i1 to i32
    %c0_i32_28 = arith.constant 0 : i32
    %49 = arith.cmpi ne, %48, %c0_i32_28 : i32
    scf.if %49 {
      %c1_i32 = arith.constant 1 : i32
      %55 = arith.muli %arg0, %c1_i32 : i32
      %56 = arith.addi %55, %arg1 : i32
      %57 = arith.index_cast %56 : i32 to index
      %58 = memref.load %arg4[%57] : memref<1xi32, #tpu.memory_space<smem>>
      %c16_i32 = arith.constant 16 : i32
      %59 = arith.muli %58, %c16_i32 : i32
      %60 = tpu.iota {dimensions = array<i32: 0>} : vector<16x1xi32>
      %61 = vector.broadcast %59 : i32 to vector<16x1xi32>
      %62 = arith.addi %61, %60 : vector<16x1xi32>
      %c16_i32_32 = arith.constant 16 : i32
      %63 = vector.broadcast %c16_i32_32 : i32 to vector<16x1xi32>
      %64 = arith.cmpi slt, %62, %63 : vector<16x1xi32>
      %65 = arith.index_cast %arg0 : i32 to index
      %66 = memref.load %arg3[%65] : memref<1xi32, #tpu.memory_space<smem>>
      %67 = arith.cmpi slt, %arg1, %66 : i32
      %68 = vector.extract_strided_slice %9 {offsets = [0, 1], sizes = [16, 1], strides = [1, 1]} : vector<16x2xi32> to vector<16x1xi32>
      %c0_i32_33 = arith.constant 0 : i32
      %69 = vector.broadcast %c0_i32_33 : i32 to vector<16x1xi32>
      %70 = arith.cmpi eq, %68, %69 : vector<16x1xi32>
      %71 = arith.andi %70, %64 : vector<16x1xi1>
      %72 = vector.broadcast %67 : i1 to vector<16x1xi1>
      %73 = arith.andi %71, %72 : vector<16x1xi1>
      %c0_34 = arith.constant 0 : index
      %c0_35 = arith.constant 0 : index
      %74 = vector.load %arg9[%c0_34, %c0_35] : memref<16x1xf32, #tpu.memory_space<vmem>>, vector<16x1xf32>
      %c0_36 = arith.constant 0 : index
      %c0_37 = arith.constant 0 : index
      %75 = vector.load %arg10[%c0_36, %c0_37] : memref<16x1xf32, #tpu.memory_space<vmem>>, vector<16x1xf32>
      %76 = math.log %75 : vector<16x1xf32>
      %77 = arith.addf %74, %76 : vector<16x1xf32>
      %c0_38 = arith.constant 0 : index
      %c0_39 = arith.constant 0 : index
      %78 = vector.load %arg12[%c0_38, %c0_39] : memref<16x1xf32, #tpu.memory_space<vmem>>, vector<16x1xf32>
      %c0_40 = arith.constant 0 : index
      %c0_41 = arith.constant 0 : index
      %79 = vector.load %arg11[%c0_40, %c0_41] : memref<16x1xf32, #tpu.memory_space<vmem>>, vector<16x1xf32>
      %80 = arith.subf %77, %79 : vector<16x1xf32>
      %cst_42 = arith.constant 0.000000e+00 : f32
      %81 = vector.broadcast %cst_42 : f32 to vector<16x1xf32>
      %82 = arith.select %73, %80, %81 : vector<16x1xi1>, vector<16x1xf32>
      %83 = arith.addf %78, %82 : vector<16x1xf32>
      %c0_43 = arith.constant 0 : index
      %c0_44 = arith.constant 0 : index
      %84 = vector.load %arg12[%c0_43, %c0_44] : memref<16x1xf32, #tpu.memory_space<vmem>>, vector<16x1xf32>
      tpu.vector_store %arg12[%c0_43, %c0_44], %83 {strides = array<i32>} : memref<16x1xf32, #tpu.memory_space<vmem>>, vector<16x1xf32>,
      %c0_45 = arith.constant 0 : index
      %c0_46 = arith.constant 0 : index
      %85 = vector.load %arg13[%c0_45, %c0_46] : memref<16x1xf32, #tpu.memory_space<vmem>>, vector<16x1xf32>
      %cst_47 = arith.constant 1.000000e+00 : f32
      %cst_48 = arith.constant 0.000000e+00 : f32
      %86 = vector.broadcast %cst_47 : f32 to vector<16x1xf32>
      %87 = vector.broadcast %cst_48 : f32 to vector<16x1xf32>
      %88 = arith.select %73, %86, %87 : vector<16x1xi1>, vector<16x1xf32>
      %89 = arith.addf %85, %88 : vector<16x1xf32>
      %c0_49 = arith.constant 0 : index
      %c0_50 = arith.constant 0 : index
      %90 = vector.load %arg13[%c0_49, %c0_50] : memref<16x1xf32, #tpu.memory_space<vmem>>, vector<16x1xf32>
      tpu.vector_store %arg13[%c0_49, %c0_50], %89 {strides = array<i32>} : memref<16x1xf32, #tpu.memory_space<vmem>>, vector<16x1xf32>,
    } else {
    }
    %c0_i32_29 = arith.constant 0 : i32
    %50 = arith.cmpi eq, %arg1, %c0_i32_29 : i32
    %c0_i32_30 = arith.constant 0 : i32
    %51 = arith.cmpi eq, %arg2, %c0_i32_30 : i32
    %52 = arith.andi %50, %51 : i1
    %53 = arith.extui %52 : i1 to i32
    %c0_i32_31 = arith.constant 0 : i32
    %54 = arith.cmpi ne, %53, %c0_i32_31 : i32
    scf.if %54 {
      %c0_32 = arith.constant 0 : index
      %c0_33 = arith.constant 0 : index
      %55 = vector.load %arg12[%c0_32, %c0_33] : memref<16x1xf32, #tpu.memory_space<vmem>>, vector<16x1xf32>
      %56 = vector.shape_cast %55 : vector<16x1xf32> to vector<1x16x1xf32>
      %cst_34 = arith.constant dense<0.000000e+00> : vector<1xf32>
      %57 = vector.multi_reduction <add>, %56, %cst_34 [1, 2] : vector<1x16x1xf32> to vector<1xf32>
      %58 = vector.shape_cast %57 : vector<1xf32> to vector<1x1x1xf32>
      %59 = vector.extract %58[0, 0, 0] : f32 from vector<1x1x1xf32>
      %60 = vector.broadcast %59 : f32 to vector<1x1x1xf32>
      %c0_35 = arith.constant 0 : index
      %c0_36 = arith.constant 0 : index
      %c0_37 = arith.constant 0 : index
      %61 = vector.load %arg7[%c0_35, %c0_36, %c0_37] : memref<1x1x1xf32, #tpu.memory_space<vmem>>, vector<1x1x1xf32>
      tpu.vector_store %arg7[%c0_35, %c0_36, %c0_37], %60 {strides = array<i32>} : memref<1x1x1xf32, #tpu.memory_space<vmem>>, vector<1x1x1xf32>,
      %c0_38 = arith.constant 0 : index
      %c0_39 = arith.constant 0 : index
      %62 = vector.load %arg13[%c0_38, %c0_39] : memref<16x1xf32, #tpu.memory_space<vmem>>, vector<16x1xf32>
      %63 = vector.shape_cast %62 : vector<16x1xf32> to vector<1x16x1xf32>
      %cst_40 = arith.constant dense<0.000000e+00> : vector<1xf32>
      %64 = vector.multi_reduction <add>, %63, %cst_40 [1, 2] : vector<1x16x1xf32> to vector<1xf32>
      %65 = vector.shape_cast %64 : vector<1xf32> to vector<1x1x1xf32>
      %66 = vector.extract %65[0, 0, 0] : f32 from vector<1x1x1xf32>
      %67 = vector.broadcast %66 : f32 to vector<1x1x1xf32>
      %c0_41 = arith.constant 0 : index
      %c0_42 = arith.constant 0 : index
      %c0_43 = arith.constant 0 : index
      %68 = vector.load %arg8[%c0_41, %c0_42, %c0_43] : memref<1x1x1xf32, #tpu.memory_space<vmem>>, vector<1x1x1xf32>
      tpu.vector_store %arg8[%c0_41, %c0_42, %c0_43], %67 {strides = array<i32>} : memref<1x1x1xf32, #tpu.memory_space<vmem>>, vector<1x1x1xf32>,
    } else {
    }
    return
  }
  func.func @transform_0(%arg0: i32, %arg1: i32, %arg2: i32, %arg3: memref<1xi32, #tpu.memory_space<smem>>, %arg4: memref<1xi32, #tpu.memory_space<smem>>) -> (i32, i32) {
    %c1_i32 = arith.constant 1 : i32
    %0 = arith.muli %arg0, %c1_i32 : i32
    %1 = arith.addi %0, %arg1 : i32
    %2 = arith.index_cast %1 : i32 to index
    %3 = memref.load %arg4[%2] : memref<1xi32, #tpu.memory_space<smem>>
    %4 = arith.index_cast %arg0 : i32 to index
    %5 = memref.load %arg3[%4] : memref<1xi32, #tpu.memory_space<smem>>
    %6 = arith.cmpi slt, %arg1, %5 : i32
    %c0_i32 = arith.constant 0 : i32
    %7 = arith.select %6, %arg2, %c0_i32 : i32
    %c0_i32_0 = arith.constant 0 : i32
    return %3, %7 : i32, i32
  }
  func.func @transform_1(%arg0: i32, %arg1: i32, %arg2: i32, %arg3: memref<1xi32, #tpu.memory_space<smem>>, %arg4: memref<1xi32, #tpu.memory_space<smem>>) -> (i32, i32) {
    %c1_i32 = arith.constant 1 : i32
    %0 = arith.muli %arg0, %c1_i32 : i32
    %1 = arith.addi %0, %arg1 : i32
    %2 = arith.index_cast %1 : i32 to index
    %3 = memref.load %arg4[%2] : memref<1xi32, #tpu.memory_space<smem>>
    %c0_i32 = arith.constant 0 : i32
    %c0_i32_0 = arith.constant 0 : i32
    return %3, %c0_i32 : i32, i32
  }
  func.func @transform_2(%arg0: i32, %arg1: i32, %arg2: i32, %arg3: memref<1xi32, #tpu.memory_space<smem>>, %arg4: memref<1xi32, #tpu.memory_space<smem>>) -> (i32, i32, i32) {
    %c0_i32 = arith.constant 0 : i32
    %c0_i32_0 = arith.constant 0 : i32
    %c0_i32_1 = arith.constant 0 : i32
    return %arg0, %c0_i32, %c0_i32_0 : i32, i32, i32
  }
  func.func @transform_3(%arg0: i32, %arg1: i32, %arg2: i32, %arg3: memref<1xi32, #tpu.memory_space<smem>>, %arg4: memref<1xi32, #tpu.memory_space<smem>>) -> (i32, i32, i32) {
    %c0_i32 = arith.constant 0 : i32
    %c0_i32_0 = arith.constant 0 : i32
    %c0_i32_1 = arith.constant 0 : i32
    return %arg0, %c0_i32, %c0_i32_0 : i32, i32, i32
  }
}

</mosaic_0001>

<bundles_post_ra>
// kernel: tpu_custom_call.1
= control target key start
LH: loop header
LB: loop body
LE: loop exit
PB: predicated region body
PF: predicated region fallthrough
CT: control target
= control target key end

     0   :  { %13 = vsyncpa [#allocation11], 0  ;;  %v123_v0 = vlaneseq  ;;  %vm103_vm0 = vcmask 7168   ;;  %s590_s0 = inlined_call_operand.<no memory space> [shape: s32[1], index: 0, kind: input, shape index: {}]   ;;  %s591_s1 = inlined_call_operand.<no memory space> [shape: s32[1], index: 1, kind: input, shape index: {}]   ;;  %s592_s2 = inlined_call_operand.vmem [shape: f32[16,32], index: 2, kind: input, shape index: {}]   ;;  %s593_s3 = inlined_call_operand.vmem [shape: s32[16,2], index: 3, kind: input, shape index: {}]   ;;  %s594_s4 = inlined_call_operand.hbm [shape: f32[1,1,1], index: 4, kind: output, shape index: {0}]   ;;  %s595_s5 = inlined_call_operand.hbm [shape: f32[1,1,1], index: 5, kind: output, shape index: {1}]  }
   0x1   :  { %s366_s20 = sshll.u32 %s591_s1, 1 }
   0x2   :  { %14 = vsyncpa [#allocation13], 0  ;;  %p74_p0 = scmp.lt.s32.totalorder %s366_s20, 1  ;;  %v455_v1 = vmov -inf   ;;  %v497_v2 = vand.u32 127, %v123_v0  ;;  %vm140_vm2 = vcmask 261120  }
   0x3   :  { %112 = vst.msk [vmem:[#allocation2] sm:$0xff] %vm103_vm0, %v455_v1  ;;  %v456_v9 = vmov 0   ;;  %v457_v10 = vmov 0.0   ;;  %v211_v58 = vshrl.u32 %v123_v0, 7  ;;  %s370_s28 = sshll.u32 %s591_s1, 4  ;;  %p371_p1 = scmp.gt.s32.totalorder %s590_s0, 0 }
   0x4   :  { %113 = vst.msk [vmem:[#allocation2 + $0x8] sm:$0xff] %vm103_vm0, %v455_v1  ;;  %s601_s20 = smov (!%p74_p0, %s366_s20), 1  ;;  %vm127_vm1 = vcmp.lt.s32.totalorder %v497_v2, 32  ;;  %383 = vset.pattern.permute.xlu1 %v456_v9  ;;  %384 = vset.pattern.permute.xlu2 %v456_v9  ;;  %v213_v60 = vstv %s370_s28  ;;  %s458_s1 = smov 1   ;;  %vm300_vm14 = vcmask 0  }
   0x5   :  { %s367_s21 = sshll.u32 %s601_s20, 3  ;;  %390 = vset.pattern.permute.xlu0 %v456_v9  ;;  %114 = vst.msk [vmem:[#allocation3] sm:$0xff] %vm103_vm0, %v457_v10  ;;  %v212_v59 = vadd.s32 8, %v211_v58  ;;  %s459_s0 = smov 127  }
   0x6   :  { %s80_s24 = scalar_lea.vmem %s592_s2, %s367_s21  ;;  %104 = vst.msk [vmem:[#allocation5] sm:$0xff] %vm103_vm0, %v457_v10  ;;  %s93_s26 = scalar_lea.vmem %s593_s3, %s367_s21 }
   0x7   :  { %v118_v3 = vld [vmem:[%s80_s24] sm:$0xff]  ;;  %v119_v6 = vld [vmem:[%s80_s24 + $0x8] sm:$0xff]  ;;  %105 = vst.msk [vmem:[#allocation5 + $0x8] sm:$0xff] %vm103_vm0, %v457_v10  ;;  %v215_v1 = vadd.s32 %v213_v60, %v212_v59  ;;  %s224_s6 = scalar_select %p371_p1, 1, 0 }
   0x8   :  { %v152_v4 = vsel %vm127_vm1, %v118_v3, -inf  ;;  %v153_v7 = vsel %vm127_vm1, %v119_v6, -inf  ;;  %106 = vst.msk [vmem:[#allocation6] sm:$0xff] %vm103_vm0, %v457_v10  ;;  %v529_v11 = vld [vmem:[%s93_s26] sm:$0xff]  ;;  %v532_v12 = vld [vmem:[%s93_s26 + $0x8] sm:$0xff]  ;;  %s460_s7 = smov [#allocation10]  }
   0x9   :  { %v156_v5 = vsel %vm140_vm2, %v152_v4, -inf  ;;  %v159_v8 = vsel %vm140_vm2, %v153_v7, -inf  ;;  %107 = vst.msk [vmem:[#allocation6 + $0x8] sm:$0xff] %vm103_vm0, %v457_v10  ;;  %131 = vperm.xlu2 %384, %v529_v11   ;;  %v214_v4 = vadd.s32 %v213_v60, %v211_v58  ;;  %vm217_vm5 = vcmp.lt.s32.totalorder %v215_v1, 16  ;;  %s323_s8 = sshll.u32 %s460_s7, 4  ;;  %s325_s11 = sshll.u32 %s594_s4, 4  ;;  %s324_s8 = int_to_ptr.vmem [resolvable:$true] %s323_s8  ;;  %s326_s11 = int_to_ptr.hbm [resolvable:$true] %s325_s11 }
   0xa   :  { %157 = vmax.xlane.f32.xlu0 %v156_v5  ;;  %115 = vst.msk [vmem:[#allocation3 + $0x8] sm:$0xff] %vm103_vm0, %v457_v10  ;;  %v154_v13 = vld [vmem:[#allocation2] sm:$0xff]  ;;  %vm221_vm6 = vcmp.eq.s32.totalorder %v532_v12, 0  ;;  %vm220_vm7 = vcmp.eq.s32.totalorder %v529_v11, 0  ;;  %s461_s12 = smov [#allocation12]   ;;  %s336_s16 = sshll.u32 %s595_s5, 4  ;;  %s337_s16 = int_to_ptr.hbm [resolvable:$true] %s336_s16 }
   0xb   :  { %116 = vst.msk [vmem:[#allocation4] sm:$0xff] %vm103_vm0, %v457_v10  ;;  %v155_v17 = vld [vmem:[#allocation2 + $0x8] sm:$0xff]  ;;  %vm216_vm8 = vcmp.lt.s32.totalorder %v214_v4, 16  ;;  %vm560_vm9 = vmand %vm221_vm6, %vm217_vm5  ;;  %s334_s13 = sshll.u32 %s461_s12, 4  ;;  %s335_s13 = int_to_ptr.vmem [resolvable:$true] %s334_s13 }
   0xc   :  { %117 = vst.msk [vmem:[#allocation4 + $0x8] sm:$0xff] %vm103_vm0, %v457_v10  ;;  %v182_v45 = vld [vmem:[#allocation3] sm:$0xff]  ;;  %vm222_vm11 = vmand %vm220_vm7, %vm216_vm8 }
  0x11   :  { %134 = vperm.xlu2 %384, %v532_v12   ;;  %v183_v50 = vld [vmem:[#allocation3 + $0x8] sm:$0xff] }
  0x12   :  { %160 = vmax.xlane.f32.xlu0 %v159_v8  ;;  %v128_v39 = vld [vmem:[#allocation4] sm:$0xff] }
  0x13   :  { %v129_v51 = vld [vmem:[#allocation4 + $0x8] sm:$0xff] }
  0x63   :  { %v132_v21 = vpop.permute.xlu2 %131 }
  0x64   :  { %vm136_vm3 = vcmp.eq.s32.totalorder %v497_v2, %v132_v21 }
  0x65   :  { %v138_v22 = vsel %vm136_vm3, %v118_v3, 0.0 }
  0x66   :  { %v141_v23 = vsel %vm140_vm2, %v138_v22, 0.0 }
  0x67   :  { %142 = vadd.xlane.f32.xlu2 %v141_v23  ;;  %v267_v23 = vld [vmem:[#allocation6] sm:$0xff] }
  0x6b   :  { %v135_v29 = vpop.permute.xlu2 %134 }
  0x6c   :  { %vm137_vm4 = vcmp.eq.s32.totalorder %v497_v2, %v135_v29 }
  0x6d   :  { %v139_v34 = vsel %vm137_vm4, %v119_v6, 0.0 }
  0x6e   :  { %v144_v36 = vsel %vm140_vm2, %v139_v34, 0.0 }
  0x7d   :  { %v158_v14 = vpop.xlane.xlu0 %157 }
  0x7e   :  { %v162_v15 = vmax.f32 %v154_v13, %v158_v14 }
  0x80   :  { %v184_v16 = vsub.f32 %v154_v13, %v162_v15  ;;  %202 = vst.msk [vmem:[#allocation2] sm:$0xff] %vm103_vm0, %v162_v15  ;;  %166 = vperm.xlu1 %383, %v162_v15  }
  0x82   :  { %v186_v42 = vmul.f32 1.442695, %v184_v16 }
  0x85   :  { %v161_v18 = vpop.xlane.xlu0 %160 }
  0x86   :  { %v163_v19 = vmax.f32 %v155_v17, %v161_v18 }
  0x87   :  { %v229_v0 = vld [vmem:[#allocation2] sm:$0xff] }
  0x88   :  { %v185_v20 = vsub.f32 %v155_v17, %v163_v19  ;;  %203 = vst.msk [vmem:[#allocation2 + $0x8] sm:$0xff] %vm103_vm0, %v163_v19  ;;  %171 = vperm.xlu1 %383, %v163_v19  }
  0x8a   :  { %v188_v43 = vmul.f32 1.442695, %v185_v20 }
  0x8f   :  { %v230_v14 = vld [vmem:[#allocation2 + $0x8] sm:$0xff] }
  0xda   :  { %v143_v40 = vpop.xlane.xlu2 %142 }
  0xdb   :  { %v147_v41 = vadd.f32 %v143_v40, %v128_v39 }
  0xdd   :  { %150 = vst.msk [vmem:[#allocation4] sm:$0xff] %vm103_vm0, %v147_v41 }
  0xe4   :  { %v241_v2 = vld [vmem:[#allocation4] sm:$0xff] }
  0xf2   :  { %v167_v24 = vpop.permute.xlu1 %166 }
  0xf3   :  { %v174_v25 = vsub.f32 %v118_v3, %v167_v24  ;;  %v268_v24 = vld [vmem:[#allocation6 + $0x8] sm:$0xff] }
  0xf5   :  { %v176_v26 = vmul.f32 1.442695, %v174_v25 }
  0xf7   :  { %391 = vpow2.f32 %v176_v26 }
  0xfa   :  { %v172_v27 = vpop.permute.xlu1 %171 }
  0xfb   :  { %v175_v28 = vsub.f32 %v119_v6, %v172_v27  ;;  %v225_v6 = vstv %s224_s6 }
  0xfc   :  { %vm564_vm10 = vcmp.eq.s32.totalorder %v225_v6, 1 }
  0xfd   :  { %v392_v30 = vpop.eup %391  ;;  %v178_v31 = vmul.f32 1.442695, %v175_v28  ;;  %vm228_vm12 = vmand %vm560_vm9, %vm564_vm10 }
  0xfe   :  { %v180_v32 = vsel %vm127_vm1, %v392_v30, 0.0  ;;  %vm227_vm13 = vmand %vm222_vm11, %vm564_vm10  ;;  %v270_v17 = vsel %vm228_vm12, 1.0, %v457_v10 }
  0xff   :  { %393 = vpow2.f32 %v178_v31  ;;  %v192_v33 = vsel %vm140_vm2, %v180_v32, 0.0  ;;  %v269_v16 = vsel %vm227_vm13, 1.0, %v457_v10  ;;  %v239_v10 = vld [vmem:[#allocation5] sm:$0xff] }
 0x100   :  { %193 = vadd.xlane.f32.xlu0 %v192_v33  ;;  %395 = vpow2.f32 %v186_v42  ;;  %v385_v18 = vpack.i.bf16 %v270_v17, %v269_v16 }
 0x101   :  { %397 = vpow2.f32 %v188_v43 }
 0x105   :  { %v394_v35 = vpop.eup %393 }
 0x106   :  { %v181_v37 = vsel %vm127_vm1, %v394_v35, 0.0  ;;  %v396_v44 = vpop.eup %395 }
 0x107   :  { %v195_v38 = vsel %vm140_vm2, %v181_v37, 0.0  ;;  %v190_v46 = vmul.f32 %v396_v44, %v182_v45  ;;  %v398_v49 = vpop.eup %397  ;;  %v240_v37 = vld [vmem:[#allocation5 + $0x8] sm:$0xff] }
 0x108   :  { %196 = vadd.xlane.f32.xlu1 %v195_v38  ;;  %145 = vadd.xlane.f32.xlu0 %v144_v36  ;;  %v191_v52 = vmul.f32 %v398_v49, %v183_v50 }
 0x173   :  { %v194_v47 = vpop.xlane.xlu0 %193 }
 0x174   :  { %v198_v48 = vadd.f32 %v194_v47, %v190_v46 }
 0x176   :  { %200 = vst.msk [vmem:[#allocation3] sm:$0xff] %vm103_vm0, %v198_v48 }
 0x17b   :  { %v197_v53 = vpop.xlane.xlu1 %196  ;;  %v146_v54 = vpop.xlane.xlu0 %145 }
 0x17c   :  { %v199_v55 = vadd.f32 %v197_v53, %v191_v52  ;;  %v148_v56 = vadd.f32 %v146_v54, %v129_v51 }
 0x17d   :  { %v231_v57 = vld [vmem:[#allocation3] sm:$0xff] }
 0x17e   :  { %201 = vst.msk [vmem:[#allocation3 + $0x8] sm:$0xff] %vm103_vm0, %v199_v55  ;;  %399 = vlog2.f32 %v231_v57 }
 0x17f   :  { %151 = vst.msk [vmem:[#allocation4 + $0x8] sm:$0xff] %vm103_vm0, %v148_v56 }
 0x184   :  { %v400_v61 = vpop.eup %399 }
 0x185   :  { %v234_v62 = vmul.f32 0.6931472, %v400_v61  ;;  %v232_v63 = vld [vmem:[#allocation3 + $0x8] sm:$0xff] }
 0x186   :  { %401 = vlog2.f32 %v232_v63  ;;  %v242_v12 = vld [vmem:[#allocation4 + $0x8] sm:$0xff] }
 0x187   :  { %v237_v3 = vadd.f32 %v234_v62, %v229_v0 }
 0x189   :  { %v243_v5 = vsub.f32 %v237_v3, %v241_v2 }
 0x18b   :  { %247 = vrot.lane.b32.xlu0 %v243_v5, %s458_s1 }
 0x18c   :  { %v402_v7 = vpop.eup %401 }
 0x18d   :  { %v236_v9 = vmul.f32 0.6931472, %v402_v7 }
 0x18f   :  { %v238_v15 = vadd.f32 %v236_v9, %v230_v14 }
 0x191   :  { %v244_v11 = vsub.f32 %v238_v15, %v242_v12 }
 0x193   :  { %249 = vrot.lane.b32.xlu0 %v244_v11, %s458_s1 }
 0x19b   :  { %386 = vrot.lane.b32.xlu0 %v385_v18, %s459_s0 }
 0x1fd   :  { %v248_v19 = vpop.permute.xlu0 %247 }
 0x1fe   :  { %v253_v20 = vsel %vm227_vm13, %v248_v19, 0.0 }
 0x1ff   :  { %257 = vrot.lane.b32.xlu2 %v253_v20, %s459_s0 }
 0x205   :  { %v250_v21 = vpop.permute.xlu0 %249 }
 0x206   :  { %v254_v22 = vsel %vm228_vm12, %v250_v21, 0.0 }
 0x207   :  { %259 = vrot.lane.b32.xlu1 %v254_v22, %s459_s0 }
 0x20d   :  { %v387_v25 = vpop.permute.xlu0 %386 }
 0x20e   :  { %v389_v26 = vunpack.i.h.bf16 %v387_v25  ;;  %v388_v27 = vunpack.i.l.bf16 %v387_v25 }
 0x210   :  { %v280_v28 = vadd.f32 %v389_v26, %v268_v24  ;;  %v279_v29 = vadd.f32 %v388_v27, %v267_v23 }
 0x212   :  { %282 = vst.msk [vmem:[#allocation6 + $0x8] sm:$0xff] %vm103_vm0, %v280_v28 }
 0x213   :  { %281 = vst.msk [vmem:[#allocation6] sm:$0xff] %vm103_vm0, %v279_v29 }
 0x219   :  { %v303_v33 = vld [vmem:[#allocation6 + $0x8] sm:$0xff] }
 0x21a   :  { %v302_v32 = vld [vmem:[#allocation6] sm:$0xff]  ;;  %v305_v35 = vsel %vm103_vm0, %v303_v33, 0.0 }
 0x21b   :  { %v304_v34 = vsel %vm103_vm0, %v302_v32, 0.0 }
 0x21c   :  { %v306_v36 = vadd.f32 %v305_v35, %v304_v34 }
 0x228   :  { %307 = vadd.xlane.f32.xlu2 %v306_v36 }
 0x259   :  { %v258_v30 = vpop.permute.xlu2 %257 }
 0x25a   :  { %v263_v31 = vadd.f32 %v258_v30, %v239_v10 }
 0x25c   :  { %265 = vst.msk [vmem:[#allocation5] sm:$0xff] %vm103_vm0, %v263_v31 }
 0x263   :  { %v285_v40 = vld [vmem:[#allocation5] sm:$0xff] }
 0x264   :  { %v287_v42 = vsel %vm103_vm0, %v285_v40, 0.0 }
 0x279   :  { %v260_v38 = vpop.permute.xlu1 %259 }
 0x27a   :  { %v264_v39 = vadd.f32 %v260_v38, %v240_v37 }
 0x27c   :  { %266 = vst.msk [vmem:[#allocation5 + $0x8] sm:$0xff] %vm103_vm0, %v264_v39 }
 0x283   :  { %v286_v41 = vld [vmem:[#allocation5 + $0x8] sm:$0xff] }
 0x284   :  { %v288_v43 = vsel %vm103_vm0, %v286_v41, 0.0 }
 0x285   :  { %v289_v44 = vadd.f32 %v288_v43, %v287_v42 }
 0x287   :  { %290 = vadd.xlane.f32.xlu0 %v289_v44 }
 0x29b   :  { %v308_v45 = vpop.xlane.xlu2 %307 }
 0x29c   :  { %v309_v46 = vrot.slane %v308_v45, 4 }
 0x29e   :  { %v310_v47 = vadd.f32 %v309_v46, %v308_v45 }
 0x2a0   :  { %v311_v48 = vrot.slane %v310_v47, 2 }
 0x2a2   :  { %v312_v52 = vadd.f32 %v311_v48, %v310_v47 }
 0x2a4   :  { %v313_v55 = vrot.slane %v312_v52, 1 }
 0x2a6   :  { %v314_v58 = vadd.f32 %v313_v55, %v312_v52 }
 0x2fa   :  { %v291_v49 = vpop.xlane.xlu0 %290 }
 0x2fb   :  { %v292_v50 = vrot.slane %v291_v49, 4 }
 0x2fd   :  { %v293_v51 = vadd.f32 %v292_v50, %v291_v49 }
 0x2ff   :  { %v294_v53 = vrot.slane %v293_v51, 2 }
 0x301   :  { %v295_v54 = vadd.f32 %v294_v53, %v293_v51 }
 0x303   :  { %v296_v56 = vrot.slane %v295_v54, 1 }
 0x305   :  { %v297_v57 = vadd.f32 %v296_v56, %v295_v54 }
 0x307   :  { %372 = vpush %v297_v57 }
 0x308   :  { %374 = vpush %v314_v58 }
 0x338   :  { %s373_s17 = spop %372 }
 0x339   :  { %v299_v59 = vstv %s373_s17  ;;  %s375_s18 = spop %374 }
 0x33a   :  { %301 = vst.msk [vmem:[#allocation10] sm:$0x1] %vm300_vm14, %v299_v59  ;;  %v316_v60 = vstv %s375_s18 }
 0x33b   :  { %317 = vst.msk [vmem:[#allocation12] sm:$0x1] %vm300_vm14, %v316_v60  ;;  %328 = dma.vmem_to_hbm [thread:$0]  %s324_s8, 16, %s326_s11, [#allocation11]  }
 0x33c   :  { %339 = dma.vmem_to_hbm [thread:$0]  %s335_s13, 16, %s337_s16, [#allocation13]  }
 0x33d   :  { %451 = dma.done.wait [#allocation11], 16  }
 0x33e   :  { %452 = vsyncadd [#allocation11], 4294967280 }
 0x33f   :  { %453 = dma.done.wait [#allocation13], 16  }
 0x340   :  { %454 = vsyncadd [#allocation13], 4294967280 }
 0x341   :  { %348 = vsyncpa [#allocation11], 1 }
 0x342   :  { %349 = vsyncpa [#allocation13], 1 }

</bundles_post_ra>
